<compile_context>
chip_gen: v7x
topology: tpu7x:2x2x1
jax: 0.10.0
libtpu: 0.0.40
codegen_flags: <defaults>
</compile_context>

<pallas_src>
import jax
import jax.numpy as jnp
from jax import lax
from jax.experimental import pallas as pl
from jax.experimental.pallas import tpu as pltpu


def _round_up(x, m):
    return (x + m - 1) // m * m


# ----------------------------------------------------------------------------
# Fused kernel.  grid = (num_batch_blocks, num_time_blocks); time is the
# reduction axis (last).  Body: masked/unmasked raw-feature sum into acc.
# Epilogue (last time block): mean-pool -> projector -> classifier ->
# softmax scores + per-sample NLL.
# ----------------------------------------------------------------------------
def _fused_forward_kernel(nblk_ref, nfull_ref,            # SMEM scalar prefetch (nB,)
                          lens_ref,                       # (1, Bb, 1) int32 VMEM
                          labels_ref,                     # (1, Bb, 1) int32 VMEM
                          feat_ref,                       # (Bb, Tt, D_up) VMEM
                          wp_ref,                         # (D_up, Dp_pad) f32
                          bp_ref,                         # (1, Dp_pad)    f32
                          wc_ref,                         # (Dp_pad, C_pad) f32
                          bc_ref,                         # (1, C_pad) f32 (-1e30 pad cls)
                          logits_ref,                     # (1, Bb, C_pad)  out
                          scores_ref,                     # (1, Bb, C_pad)  out
                          pooled_ref,                     # (1, Bb, Dp_pad) out
                          nll_ref,                        # (1, Bb, 1)      out
                          acc_ref):                       # (Bb, D_up) f32 scratch
    i = pl.program_id(0)
    t = pl.program_id(1)
    nT = pl.num_programs(1)
    Bb, Tt, _ = feat_ref.shape

    n_active = nblk_ref[i]        # time blocks containing any valid frame
    n_full = nfull_ref[i]         # time blocks fully valid for every row

    @pl.when(t == 0)
    def _init():
        acc_ref[...] = jnp.zeros_like(acc_ref)

    # Interior blocks: every frame valid for every row -> plain unmasked sum
    # (no iota / compare / select).
    @pl.when(t < n_full)
    def _full_block():
        acc_ref[...] += jnp.sum(feat_ref[...].astype(jnp.float32), axis=1)

    # Tail blocks: mask with jnp.where so unspecified out-of-bounds frames in
    # the ragged last block (no wrapper-side padding!) cannot inject NaN.
    @pl.when(jnp.logical_and(t >= n_full, t < n_active))
    def _partial_block():
        x = feat_ref[...].astype(jnp.float32)                       # (Bb, Tt, D_up)
        lens = lens_ref[0]                                          # (Bb, 1) int32
        t_idx = lax.broadcasted_iota(jnp.int32, (Bb, Tt, 1), 1) + t * Tt
        mask = t_idx < lens[:, :, None]                             # (Bb, Tt, 1) bool
        acc_ref[...] += jnp.sum(jnp.where(mask, x, 0.0), axis=1)

    # Blocks with t >= n_active: compute skipped entirely; the feature
    # index_map also clamps to n_active-1 so no new DMA is issued for them.

    @pl.when(t == nT - 1)
    def _epilogue():
        lens_f = lens_ref[0].astype(jnp.float32)                    # (Bb, 1)
        denom = jnp.maximum(lens_f, 1.0)                            # guard len == 0
        pooled_raw = acc_ref[...] / denom                           # (Bb, D_up)

        # projector applied AFTER pooling (mean(xW+b) == mean(x)W + b)
        pooled = jnp.dot(pooled_raw, wp_ref[...],
                         preferred_element_type=jnp.float32) + bp_ref[...]
        logits = jnp.dot(pooled, wc_ref[...],
                         preferred_element_type=jnp.float32) + bc_ref[...]

        # softmax scores + cross-entropy (padded classes have logit ~ -1e30)
        m = jnp.max(logits, axis=-1, keepdims=True)
        ex = jnp.exp(logits - m)
        sumex = jnp.sum(ex, axis=-1, keepdims=True)
        scores = ex / sumex
        lse = jnp.log(sumex) + m

        cls = lax.broadcasted_iota(jnp.int32, logits.shape, 1)
        onehot = (cls == labels_ref[0]).astype(jnp.float32)
        target_logit = jnp.sum(onehot * logits, axis=-1, keepdims=True)

        logits_ref[0] = logits
        scores_ref[0] = scores
        pooled_ref[0] = pooled
        nll_ref[0] = lse - target_logit


def fused_forward(features, lengths, labels, wp, bp, wc, bc, *,
                  time_block=None,
                  tile_budget_bytes=12 * 1024 * 1024,
                  vmem_limit_bytes=48 * 1024 * 1024):
    """features: (B, T, D_up) float (f32 or bf16, streamed as-is),
    lengths/labels: (B,) int. Returns (loss, logits (B,C), scores (B,C),
    pooled (B,D_proj), nll (B,))."""
    B, T, D_up = features.shape
    D_proj = wp.shape[1]
    C = wc.shape[1]

    # ---- lane-dense padded parameters (zero cols; -1e30 bias on padded classes)
    Dp_pad = _round_up(D_proj, 128)
    C_pad = _round_up(C, 128)
    wp_p = jnp.zeros((D_up, Dp_pad), jnp.float32).at[:, :D_proj].set(wp.astype(jnp.float32))
    bp_p = jnp.zeros((1, Dp_pad), jnp.float32).at[:, :D_proj].set(
        bp.reshape(1, D_proj).astype(jnp.float32))
    wc_p = jnp.zeros((Dp_pad, C_pad), jnp.float32).at[:D_proj, :C].set(wc.astype(jnp.float32))
    bc_p = jnp.full((1, C_pad), -1e30, jnp.float32).at[:, :C].set(
        bc.reshape(1, C).astype(jnp.float32))

    # ---- batch blocking: >= 2 parallel blocks whenever B >= 2 (v7x dual TC)
    if B >= 16:
        Bb = 8
    else:
        Bb = max(1, (B + 1) // 2)
    nB = pl.cdiv(B, Bb)
    B_pad = nB * Bb

    # ---- time blocking: largest multiple-of-8 tile under the VMEM budget
    itemsize = jnp.dtype(features.dtype).itemsize
    if time_block is None:
        rows = max(8, tile_budget_bytes // max(1, Bb * D_up * itemsize))
        Tt = max(8, (rows // 8) * 8)
        Tt = min(Tt, _round_up(T, 8))
    else:
        Tt = time_block
    nT = pl.cdiv(T, Tt)

    # ---- per-row metadata in a (nB, Bb, 1) layout (only these tiny 1-D arrays
    #      get padded; the big feature tensor is streamed unpadded)
    lens_pad = jnp.zeros((B_pad,), jnp.int32).at[:B].set(lengths.astype(jnp.int32))
    labs_pad = jnp.zeros((B_pad,), jnp.int32).at[:B].set(labels.astype(jnp.int32))
    lens3 = lens_pad.reshape(nB, Bb, 1)
    labs3 = labs_pad.reshape(nB, Bb, 1)

    # ---- per-batch-block schedule (scalar prefetch, SMEM)
    lens_blk = lens_pad.reshape(nB, Bb)
    blk_max = jnp.max(lens_blk, axis=1)
    blk_min = jnp.min(lens_blk, axis=1)
    nblk = jnp.clip((blk_max + Tt - 1) // Tt, 1, nT).astype(jnp.int32)   # any valid frame
    nfull = jnp.minimum(blk_min // Tt, nT).astype(jnp.int32)             # all rows fully valid

    grid_spec = pltpu.PrefetchScalarGridSpec(
        num_scalar_prefetch=2,
        grid=(nB, nT),
        in_specs=[
            pl.BlockSpec((1, Bb, 1), lambda i, t, nb, nf: (i, 0, 0)),        # lengths
            pl.BlockSpec((1, Bb, 1), lambda i, t, nb, nf: (i, 0, 0)),        # labels
            # clamp the time-block index so frames past this batch block's
            # longest utterance are never re-DMA'd
            pl.BlockSpec((Bb, Tt, D_up),
                         lambda i, t, nb, nf: (i, jnp.minimum(t, nb[i] - 1), 0)),
            pl.BlockSpec((D_up, Dp_pad), lambda i, t, nb, nf: (0, 0)),        # wp
            pl.BlockSpec((1, Dp_pad), lambda i, t, nb, nf: (0, 0)),           # bp
            pl.BlockSpec((Dp_pad, C_pad), lambda i, t, nb, nf: (0, 0)),       # wc
            pl.BlockSpec((1, C_pad), lambda i, t, nb, nf: (0, 0)),            # bc
        ],
        out_specs=[
            pl.BlockSpec((1, Bb, C_pad), lambda i, t, nb, nf: (i, 0, 0)),     # logits
            pl.BlockSpec((1, Bb, C_pad), lambda i, t, nb, nf: (i, 0, 0)),     # scores
            pl.BlockSpec((1, Bb, Dp_pad), lambda i, t, nb, nf: (i, 0, 0)),    # pooled
            pl.BlockSpec((1, Bb, 1), lambda i, t, nb, nf: (i, 0, 0)),         # nll
        ],
        scratch_shapes=[pltpu.VMEM((Bb, D_up), jnp.float32)],
    )

    logits_p, scores_p, pooled_p, nll_p = pl.pallas_call(
        _fused_forward_kernel,
        out_shape=(jax.ShapeDtypeStruct((nB, Bb, C_pad), jnp.float32),
                   jax.ShapeDtypeStruct((nB, Bb, C_pad), jnp.float32),
                   jax.ShapeDtypeStruct((nB, Bb, Dp_pad), jnp.float32),
                   jax.ShapeDtypeStruct((nB, Bb, 1), jnp.float32)),
        grid_spec=grid_spec,
        compiler_params=pltpu.CompilerParams(
            dimension_semantics=("parallel", "arbitrary"),
            vmem_limit_bytes=vmem_limit_bytes),
    )(nblk, nfull, lens3, labs3, features, wp_p, bp_p, wc_p, bc_p)

    logits = logits_p.reshape(B_pad, C_pad)[:B, :C]
    scores = scores_p.reshape(B_pad, C_pad)[:B, :C]
    pooled = pooled_p.reshape(B_pad, Dp_pad)[:B, :D_proj]
    nll = nll_p.reshape(B_pad)[:B]
    loss = jnp.mean(nll)                 # nn.CrossEntropyLoss() mean reduction
    return loss, logits, scores, pooled, nll


# ----------------------------------------------------------------------------
# DownstreamExpert-equivalent forward (eval path), parameters built in-script
# ----------------------------------------------------------------------------
class DownstreamExpertPallas:
    def __init__(self, upstream_dim, projector_dim, class_num, key):
        k1, k2, k3, k4 = jax.random.split(key, 4)
        # torch nn.Linear default init: U(-1/sqrt(fan_in), 1/sqrt(fan_in))
        bp_lim = 1.0 / jnp.sqrt(jnp.float32(upstream_dim))
        bc_lim = 1.0 / jnp.sqrt(jnp.float32(projector_dim))
        # stored as (in, out) so the kernel computes x @ W + b
        self.wp = jax.random.uniform(k1, (upstream_dim, projector_dim),
                                     jnp.float32, -bp_lim, bp_lim)
        self.bp = jax.random.uniform(k2, (1, projector_dim),
                                     jnp.float32, -bp_lim, bp_lim)
        self.wc = jax.random.uniform(k3, (projector_dim, class_num),
                                     jnp.float32, -bc_lim, bc_lim)
        self.bc = jax.random.uniform(k4, (1, class_num),
                                     jnp.float32, -bc_lim, bc_lim)
        self.class_num = class_num
        self._fused_forward = jax.jit(
            fused_forward,
            static_argnames=("time_block", "tile_budget_bytes", "vmem_limit_bytes"))

    def forward(self, features_padded, features_len, labels):
        loss, logits, scores, pooled, _nll = self._fused_forward(
            features_padded, features_len, labels,
            self.wp, self.bp, self.wc, self.bc)
        predicted_classid = jnp.argmax(logits, axis=-1)
        acc = (predicted_classid == labels).astype(jnp.float32)
        # TODO(synk): record-keeping / file IO / pickle embedding dumps /
        # AUC/EER/UAR metrics & plots and the train-mode mixup / batch
        # distortion augmentations from the original module have no Pallas
        # equivalent.
        return loss, logits, pooled, scores, predicted_classid, acc


def _reference_forward(feats, lens, labels, wp, bp, wc, bc):
    """Pure-JAX reference matching the torch module (project -> masked mean)."""
    B, T, _ = feats.shape
    proj = feats.astype(jnp.float32) @ wp + bp                       # (B, T, Dp)
    mask = (jnp.arange(T)[None, :] < lens[:, None]).astype(jnp.float32)
    pooled = (proj * mask[:, :, None]).sum(1) / jnp.maximum(lens, 1)[:, None]
    logits = pooled @ wc + bc
    logp = jax.nn.log_softmax(logits, axis=-1)
    nll = -jnp.take_along_axis(logp, labels[:, None], axis=1)[:, 0]
    return jnp.mean(nll), logits


if __name__ == "__main__":
    key = jax.random.PRNGKey(0)
    kf, kp = jax.random.split(key, 2)

    # small shapes consistent with the module
    B, T = 2, 8                 # batch of utterances, max frames
    upstream_dim = 32           # upstream feature dim
    projector_dim = 16          # modelrc['projector_dim']
    class_num = 2               # HEALTH / PATH

    # variable-length utterances, zero-padded (pad_sequence batch_first=True)
    features_len = jnp.array([8, 5], dtype=jnp.int32)
    feats = jax.random.normal(kf, (B, T, upstream_dim), dtype=jnp.float32)
    t_idx = jnp.arange(T)[None, :, None]
    feats = jnp.where(t_idx < features_len[:, None, None], feats, 0.0)

    labels = jnp.array([1, 0], dtype=jnp.int32)

    expert = DownstreamExpertPallas(upstream_dim, projector_dim, class_num, kp)
    outs = expert.forward(feats, features_len, labels)
    jax.block_until_ready(outs)

    loss, logits = outs[0], outs[1]
    ref_loss, ref_logits = _reference_forward(
        feats, features_len, labels, expert.wp, expert.bp, expert.wc, expert.bc)
    assert bool(jnp.allclose(logits, ref_logits, rtol=1e-4, atol=1e-5)), "logits mismatch"
    assert bool(jnp.allclose(loss, ref_loss, rtol=1e-4, atol=1e-5)), "loss mismatch"

    print("KERNEL_OK")
</pallas_src>

<mosaic_0001>
module attributes {stable_mosaic.version = 11 : i64} {
  func.func @_fused_forward_kernel(%arg0: i32, %arg1: i32, %arg2: memref<2xi32, #tpu.memory_space<smem>>, %arg3: memref<2xi32, #tpu.memory_space<smem>>, %arg4: memref<1x1x1xi32, #tpu.memory_space<vmem>>, %arg5: memref<1x1x1xi32, #tpu.memory_space<vmem>>, %arg6: memref<1x8x32xf32, #tpu.memory_space<vmem>>, %arg7: memref<32x128xf32, #tpu.memory_space<vmem>>, %arg8: memref<1x128xf32, #tpu.memory_space<vmem>>, %arg9: memref<128x128xf32, #tpu.memory_space<vmem>>, %arg10: memref<1x128xf32, #tpu.memory_space<vmem>>, %arg11: memref<1x1x128xf32, #tpu.memory_space<vmem>>, %arg12: memref<1x1x128xf32, #tpu.memory_space<vmem>>, %arg13: memref<1x1x128xf32, #tpu.memory_space<vmem>>, %arg14: memref<1x1x1xf32, #tpu.memory_space<vmem>>, %arg15: memref<1x32xf32, #tpu.memory_space<vmem>>) attributes {dimension_semantics = [#tpu.dimension_semantics<parallel>, #tpu.dimension_semantics<arbitrary>], iteration_bounds = array<i64: 2, 1>, scalar_prefetch = 2 : i64, scratch_operands = 1 : i64, tpu.core_type = #tpu.core_type<tc>, window_params = [{transform_indices = @transform_0, window_bounds = array<i64: 1, 1, 1>}, {transform_indices = @transform_1, window_bounds = array<i64: 1, 1, 1>}, {transform_indices = @transform_2, window_bounds = array<i64: 1, 8, 32>}, {pipeline_mode = #tpu.pipeline_mode<synchronous>, transform_indices = @transform_3, window_bounds = array<i64: 32, 128>}, {pipeline_mode = #tpu.pipeline_mode<synchronous>, transform_indices = @transform_4, window_bounds = array<i64: 1, 128>}, {pipeline_mode = #tpu.pipeline_mode<synchronous>, transform_indices = @transform_5, window_bounds = array<i64: 128, 128>}, {pipeline_mode = #tpu.pipeline_mode<synchronous>, transform_indices = @transform_6, window_bounds = array<i64: 1, 128>}, {transform_indices = @transform_7, window_bounds = array<i64: 1, 1, 128>}, {transform_indices = @transform_8, window_bounds = array<i64: 1, 1, 128>}, {transform_indices = @transform_9, window_bounds = array<i64: 1, 1, 128>}, {transform_indices = @transform_10, window_bounds = array<i64: 1, 1, 1>}]} {
    %0 = arith.index_cast %arg0 : i32 to index
    %1 = memref.load %arg2[%0] : memref<2xi32, #tpu.memory_space<smem>>
    %2 = arith.index_cast %arg0 : i32 to index
    %3 = memref.load %arg3[%2] : memref<2xi32, #tpu.memory_space<smem>>
    %c0_i32 = arith.constant 0 : i32
    %4 = arith.cmpi eq, %arg1, %c0_i32 : i32
    %5 = arith.extui %4 : i1 to i32
    %c0_i32_0 = arith.constant 0 : i32
    %6 = arith.cmpi ne, %5, %c0_i32_0 : i32
    scf.if %6 {
      %cst = arith.constant 0.000000e+00 : f32
      %18 = vector.broadcast %cst : f32 to vector<1x32xf32>
      %c0 = arith.constant 0 : index
      %c0_5 = arith.constant 0 : index
      %19 = vector.load %arg15[%c0, %c0_5] : memref<1x32xf32, #tpu.memory_space<vmem>>, vector<1x32xf32>
      tpu.vector_store %arg15[%c0, %c0_5], %18 {strides = array<i32>} : memref<1x32xf32, #tpu.memory_space<vmem>>, vector<1x32xf32>,
    } else {
    }
    %7 = arith.cmpi slt, %arg1, %3 : i32
    %8 = arith.extui %7 : i1 to i32
    %c0_i32_1 = arith.constant 0 : i32
    %9 = arith.cmpi ne, %8, %c0_i32_1 : i32
    scf.if %9 {
      %c0 = arith.constant 0 : index
      %c0_5 = arith.constant 0 : index
      %18 = vector.load %arg15[%c0, %c0_5] : memref<1x32xf32, #tpu.memory_space<vmem>>, vector<1x32xf32>
      %c0_6 = arith.constant 0 : index
      %c0_7 = arith.constant 0 : index
      %c0_8 = arith.constant 0 : index
      %19 = vector.load %arg6[%c0_6, %c0_7, %c0_8] : memref<1x8x32xf32, #tpu.memory_space<vmem>>, vector<1x8x32xf32>
      %cst = arith.constant dense<0.000000e+00> : vector<1x32xf32>
      %20 = vector.multi_reduction <add>, %19, %cst [1] : vector<1x8x32xf32> to vector<1x32xf32>
      %21 = arith.addf %18, %20 : vector<1x32xf32>
      %c0_9 = arith.constant 0 : index
      %c0_10 = arith.constant 0 : index
      %22 = vector.load %arg15[%c0_9, %c0_10] : memref<1x32xf32, #tpu.memory_space<vmem>>, vector<1x32xf32>
      tpu.vector_store %arg15[%c0_9, %c0_10], %21 {strides = array<i32>} : memref<1x32xf32, #tpu.memory_space<vmem>>, vector<1x32xf32>,
    } else {
    }
    %10 = arith.cmpi sge, %arg1, %3 : i32
    %11 = arith.cmpi slt, %arg1, %1 : i32
    %12 = arith.andi %10, %11 : i1
    %13 = arith.extui %12 : i1 to i32
    %c0_i32_2 = arith.constant 0 : i32
    %14 = arith.cmpi ne, %13, %c0_i32_2 : i32
    scf.if %14 {
      %c0 = arith.constant 0 : index
      %c0_5 = arith.constant 0 : index
      %c0_6 = arith.constant 0 : index
      %18 = vector.load %arg6[%c0, %c0_5, %c0_6] : memref<1x8x32xf32, #tpu.memory_space<vmem>>, vector<1x8x32xf32>
      %c0_7 = arith.constant 0 : index
      %c0_8 = arith.constant 0 : index
      %c0_9 = arith.constant 0 : index
      %19 = vector.load %arg4[%c0_7, %c0_8, %c0_9] : memref<1x1x1xi32, #tpu.memory_space<vmem>>, vector<1x1x1xi32>
      %20 = vector.shape_cast %19 : vector<1x1x1xi32> to vector<1x1xi32>
      %21 = tpu.iota {dimensions = array<i32: 1>} : vector<1x8x1xi32>
      %c8_i32 = arith.constant 8 : i32
      %22 = arith.muli %arg1, %c8_i32 : i32
      %23 = vector.broadcast %22 : i32 to vector<1x8x1xi32>
      %24 = arith.addi %21, %23 : vector<1x8x1xi32>
      %25 = vector.shape_cast %20 : vector<1x1xi32> to vector<1x1x1xi32>
      %26 = vector.broadcast %25 : vector<1x1x1xi32> to vector<1x8x1xi32>
      %27 = arith.cmpi slt, %24, %26 : vector<1x8x1xi32>
      %c0_10 = arith.constant 0 : index
      %c0_11 = arith.constant 0 : index
      %28 = vector.load %arg15[%c0_10, %c0_11] : memref<1x32xf32, #tpu.memory_space<vmem>>, vector<1x32xf32>
      %cst = arith.constant 0.000000e+00 : f32
      %29 = vector.shape_cast %27 : vector<1x8x1xi1> to vector<1x8x1xi1>
      %30 = vector.broadcast %29 : vector<1x8x1xi1> to vector<1x8x32xi1>
      %31 = vector.broadcast %cst : f32 to vector<1x8x32xf32>
      %32 = arith.select %30, %18, %31 : vector<1x8x32xi1>, vector<1x8x32xf32>
      %cst_12 = arith.constant dense<0.000000e+00> : vector<1x32xf32>
      %33 = vector.multi_reduction <add>, %32, %cst_12 [1] : vector<1x8x32xf32> to vector<1x32xf32>
      %34 = arith.addf %28, %33 : vector<1x32xf32>
      %c0_13 = arith.constant 0 : index
      %c0_14 = arith.constant 0 : index
      %35 = vector.load %arg15[%c0_13, %c0_14] : memref<1x32xf32, #tpu.memory_space<vmem>>, vector<1x32xf32>
      tpu.vector_store %arg15[%c0_13, %c0_14], %34 {strides = array<i32>} : memref<1x32xf32, #tpu.memory_space<vmem>>, vector<1x32xf32>,
    } else {
    }
    %c0_i32_3 = arith.constant 0 : i32
    %15 = arith.cmpi eq, %arg1, %c0_i32_3 : i32
    %16 = arith.extui %15 : i1 to i32
    %c0_i32_4 = arith.constant 0 : i32
    %17 = arith.cmpi ne, %16, %c0_i32_4 : i32
    scf.if %17 {
      %c0 = arith.constant 0 : index
      %c0_5 = arith.constant 0 : index
      %c0_6 = arith.constant 0 : index
      %18 = vector.load %arg4[%c0, %c0_5, %c0_6] : memref<1x1x1xi32, #tpu.memory_space<vmem>>, vector<1x1x1xi32>
      %19 = vector.shape_cast %18 : vector<1x1x1xi32> to vector<1x1xi32>
      %20 = arith.sitofp %19 : vector<1x1xi32> to vector<1x1xf32>
      %cst = arith.constant 1.000000e+00 : f32
      %21 = vector.broadcast %cst : f32 to vector<1x1xf32>
      %22 = arith.maximumf %20, %21 : vector<1x1xf32>
      %c0_7 = arith.constant 0 : index
      %c0_8 = arith.constant 0 : index
      %23 = vector.load %arg15[%c0_7, %c0_8] : memref<1x32xf32, #tpu.memory_space<vmem>>, vector<1x32xf32>
      %24 = vector.broadcast %22 : vector<1x1xf32> to vector<1x32xf32>
      %25 = arith.divf %23, %24 : vector<1x32xf32>
      %c0_9 = arith.constant 0 : index
      %c0_10 = arith.constant 0 : index
      %26 = vector.load %arg7[%c0_9, %c0_10] : memref<32x128xf32, #tpu.memory_space<vmem>>, vector<32x128xf32>
      %cst_11 = arith.constant dense<0.000000e+00> : vector<1x128xf32>
      %27 = tpu.matmul %25, %26, %cst_11 {dimension_numbers = #tpu.dot_dimension_numbers<[1], [0], [0], [1], [0, 0, 1, 1], [], []>} : vector<1x32xf32>, vector<32x128xf32>, vector<1x128xf32> -> vector<1x128xf32>
      %c0_12 = arith.constant 0 : index
      %c0_13 = arith.constant 0 : index
      %28 = vector.load %arg8[%c0_12, %c0_13] : memref<1x128xf32, #tpu.memory_space<vmem>>, vector<1x128xf32>
      %29 = arith.addf %27, %28 : vector<1x128xf32>
      %c0_14 = arith.constant 0 : index
      %c0_15 = arith.constant 0 : index
      %30 = vector.load %arg9[%c0_14, %c0_15] : memref<128x128xf32, #tpu.memory_space<vmem>>, vector<128x128xf32>
      %cst_16 = arith.constant dense<0.000000e+00> : vector<1x128xf32>
      %31 = tpu.matmul %29, %30, %cst_16 {dimension_numbers = #tpu.dot_dimension_numbers<[1], [0], [0], [1], [0, 0, 1, 1], [], []>} : vector<1x128xf32>, vector<128x128xf32>, vector<1x128xf32> -> vector<1x128xf32>
      %c0_17 = arith.constant 0 : index
      %c0_18 = arith.constant 0 : index
      %32 = vector.load %arg10[%c0_17, %c0_18] : memref<1x128xf32, #tpu.memory_space<vmem>>, vector<1x128xf32>
      %33 = arith.addf %31, %32 : vector<1x128xf32>
      %cst_19 = arith.constant dense<0xFF800000> : vector<1xf32>
      %34 = vector.multi_reduction <maximumf>, %33, %cst_19 [1] : vector<1x128xf32> to vector<1xf32>
      %35 = vector.shape_cast %34 : vector<1xf32> to vector<1x1xf32>
      %36 = vector.broadcast %35 : vector<1x1xf32> to vector<1x128xf32>
      %37 = arith.subf %33, %36 : vector<1x128xf32>
      %38 = math.exp %37 : vector<1x128xf32>
      %cst_20 = arith.constant dense<0.000000e+00> : vector<1xf32>
      %39 = vector.multi_reduction <add>, %38, %cst_20 [1] : vector<1x128xf32> to vector<1xf32>
      %40 = vector.shape_cast %39 : vector<1xf32> to vector<1x1xf32>
      %41 = vector.broadcast %40 : vector<1x1xf32> to vector<1x128xf32>
      %42 = arith.divf %38, %41 : vector<1x128xf32>
      %43 = math.log %40 : vector<1x1xf32>
      %44 = arith.addf %43, %35 : vector<1x1xf32>
      %45 = tpu.iota {dimensions = array<i32: 1>} : vector<1x128xi32>
      %c0_21 = arith.constant 0 : index
      %c0_22 = arith.constant 0 : index
      %c0_23 = arith.constant 0 : index
      %46 = vector.load %arg5[%c0_21, %c0_22, %c0_23] : memref<1x1x1xi32, #tpu.memory_space<vmem>>, vector<1x1x1xi32>
      %47 = vector.shape_cast %46 : vector<1x1x1xi32> to vector<1x1xi32>
      %48 = vector.broadcast %47 : vector<1x1xi32> to vector<1x128xi32>
      %49 = arith.cmpi eq, %45, %48 : vector<1x128xi32>
      %50 = arith.extui %49 : vector<1x128xi1> to vector<1x128xi32>
      %51 = arith.sitofp %50 : vector<1x128xi32> to vector<1x128xf32>
      %52 = arith.mulf %51, %33 : vector<1x128xf32>
      %cst_24 = arith.constant dense<0.000000e+00> : vector<1xf32>
      %53 = vector.multi_reduction <add>, %52, %cst_24 [1] : vector<1x128xf32> to vector<1xf32>
      %54 = vector.shape_cast %53 : vector<1xf32> to vector<1x1xf32>
      %c0_25 = arith.constant 0 : index
      %c0_26 = arith.constant 0 : index
      %c0_27 = arith.constant 0 : index
      %55 = vector.load %arg11[%c0_25, %c0_26, %c0_27] : memref<1x1x128xf32, #tpu.memory_space<vmem>>, vector<1x1x128xf32>
      %56 = vector.shape_cast %55 : vector<1x1x128xf32> to vector<1x128xf32>
      %57 = vector.shape_cast %33 : vector<1x128xf32> to vector<1x1x128xf32>
      tpu.vector_store %arg11[%c0_25, %c0_26, %c0_27], %57 {strides = array<i32>} : memref<1x1x128xf32, #tpu.memory_space<vmem>>, vector<1x1x128xf32>,
      %c0_28 = arith.constant 0 : index
      %c0_29 = arith.constant 0 : index
      %c0_30 = arith.constant 0 : index
      %58 = vector.load %arg12[%c0_28, %c0_29, %c0_30] : memref<1x1x128xf32, #tpu.memory_space<vmem>>, vector<1x1x128xf32>
      %59 = vector.shape_cast %58 : vector<1x1x128xf32> to vector<1x128xf32>
      %60 = vector.shape_cast %42 : vector<1x128xf32> to vector<1x1x128xf32>
      tpu.vector_store %arg12[%c0_28, %c0_29, %c0_30], %60 {strides = array<i32>} : memref<1x1x128xf32, #tpu.memory_space<vmem>>, vector<1x1x128xf32>,
      %c0_31 = arith.constant 0 : index
      %c0_32 = arith.constant 0 : index
      %c0_33 = arith.constant 0 : index
      %61 = vector.load %arg13[%c0_31, %c0_32, %c0_33] : memref<1x1x128xf32, #tpu.memory_space<vmem>>, vector<1x1x128xf32>
      %62 = vector.shape_cast %61 : vector<1x1x128xf32> to vector<1x128xf32>
      %63 = vector.shape_cast %29 : vector<1x128xf32> to vector<1x1x128xf32>
      tpu.vector_store %arg13[%c0_31, %c0_32, %c0_33], %63 {strides = array<i32>} : memref<1x1x128xf32, #tpu.memory_space<vmem>>, vector<1x1x128xf32>,
      %64 = arith.subf %44, %54 : vector<1x1xf32>
      %c0_34 = arith.constant 0 : index
      %c0_35 = arith.constant 0 : index
      %c0_36 = arith.constant 0 : index
      %65 = vector.load %arg14[%c0_34, %c0_35, %c0_36] : memref<1x1x1xf32, #tpu.memory_space<vmem>>, vector<1x1x1xf32>
      %66 = vector.shape_cast %65 : vector<1x1x1xf32> to vector<1x1xf32>
      %67 = vector.shape_cast %64 : vector<1x1xf32> to vector<1x1x1xf32>
      tpu.vector_store %arg14[%c0_34, %c0_35, %c0_36], %67 {strides = array<i32>} : memref<1x1x1xf32, #tpu.memory_space<vmem>>, vector<1x1x1xf32>,
    } else {
    }
    return
  }
  func.func @transform_0(%arg0: i32, %arg1: i32, %arg2: memref<2xi32, #tpu.memory_space<smem>>, %arg3: memref<2xi32, #tpu.memory_space<smem>>) -> (i32, i32, i32) {
    %c0_i32 = arith.constant 0 : i32
    %c0_i32_0 = arith.constant 0 : i32
    %c0_i32_1 = arith.constant 0 : i32
    return %arg0, %c0_i32, %c0_i32_0 : i32, i32, i32
  }
  func.func @transform_1(%arg0: i32, %arg1: i32, %arg2: memref<2xi32, #tpu.memory_space<smem>>, %arg3: memref<2xi32, #tpu.memory_space<smem>>) -> (i32, i32, i32) {
    %c0_i32 = arith.constant 0 : i32
    %c0_i32_0 = arith.constant 0 : i32
    %c0_i32_1 = arith.constant 0 : i32
    return %arg0, %c0_i32, %c0_i32_0 : i32, i32, i32
  }
  func.func @transform_2(%arg0: i32, %arg1: i32, %arg2: memref<2xi32, #tpu.memory_space<smem>>, %arg3: memref<2xi32, #tpu.memory_space<smem>>) -> (i32, i32, i32) {
    %0 = arith.index_cast %arg0 : i32 to index
    %1 = memref.load %arg2[%0] : memref<2xi32, #tpu.memory_space<smem>>
    %c1_i32 = arith.constant 1 : i32
    %2 = arith.subi %1, %c1_i32 : i32
    %3 = arith.minsi %arg1, %2 : i32
    %c0_i32 = arith.constant 0 : i32
    %c0_i32_0 = arith.constant 0 : i32
    return %arg0, %3, %c0_i32 : i32, i32, i32
  }
  func.func @transform_3(%arg0: i32, %arg1: i32, %arg2: memref<2xi32, #tpu.memory_space<smem>>, %arg3: memref<2xi32, #tpu.memory_space<smem>>) -> (i32, i32) {
    %c0_i32 = arith.constant 0 : i32
    %c0_i32_0 = arith.constant 0 : i32
    %c0_i32_1 = arith.constant 0 : i32
    return %c0_i32, %c0_i32_0 : i32, i32
  }
  func.func @transform_4(%arg0: i32, %arg1: i32, %arg2: memref<2xi32, #tpu.memory_space<smem>>, %arg3: memref<2xi32, #tpu.memory_space<smem>>) -> (i32, i32) {
    %c0_i32 = arith.constant 0 : i32
    %c0_i32_0 = arith.constant 0 : i32
    %c0_i32_1 = arith.constant 0 : i32
    return %c0_i32, %c0_i32_0 : i32, i32
  }
  func.func @transform_5(%arg0: i32, %arg1: i32, %arg2: memref<2xi32, #tpu.memory_space<smem>>, %arg3: memref<2xi32, #tpu.memory_space<smem>>) -> (i32, i32) {
    %c0_i32 = arith.constant 0 : i32
    %c0_i32_0 = arith.constant 0 : i32
    %c0_i32_1 = arith.constant 0 : i32
    return %c0_i32, %c0_i32_0 : i32, i32
  }
  func.func @transform_6(%arg0: i32, %arg1: i32, %arg2: memref<2xi32, #tpu.memory_space<smem>>, %arg3: memref<2xi32, #tpu.memory_space<smem>>) -> (i32, i32) {
    %c0_i32 = arith.constant 0 : i32
    %c0_i32_0 = arith.constant 0 : i32
    %c0_i32_1 = arith.constant 0 : i32
    return %c0_i32, %c0_i32_0 : i32, i32
  }
  func.func @transform_7(%arg0: i32, %arg1: i32, %arg2: memref<2xi32, #tpu.memory_space<smem>>, %arg3: memref<2xi32, #tpu.memory_space<smem>>) -> (i32, i32, i32) {
    %c0_i32 = arith.constant 0 : i32
    %c0_i32_0 = arith.constant 0 : i32
    %c0_i32_1 = arith.constant 0 : i32
    return %arg0, %c0_i32, %c0_i32_0 : i32, i32, i32
  }
  func.func @transform_8(%arg0: i32, %arg1: i32, %arg2: memref<2xi32, #tpu.memory_space<smem>>, %arg3: memref<2xi32, #tpu.memory_space<smem>>) -> (i32, i32, i32) {
    %c0_i32 = arith.constant 0 : i32
    %c0_i32_0 = arith.constant 0 : i32
    %c0_i32_1 = arith.constant 0 : i32
    return %arg0, %c0_i32, %c0_i32_0 : i32, i32, i32
  }
  func.func @transform_9(%arg0: i32, %arg1: i32, %arg2: memref<2xi32, #tpu.memory_space<smem>>, %arg3: memref<2xi32, #tpu.memory_space<smem>>) -> (i32, i32, i32) {
    %c0_i32 = arith.constant 0 : i32
    %c0_i32_0 = arith.constant 0 : i32
    %c0_i32_1 = arith.constant 0 : i32
    return %arg0, %c0_i32, %c0_i32_0 : i32, i32, i32
  }
  func.func @transform_10(%arg0: i32, %arg1: i32, %arg2: memref<2xi32, #tpu.memory_space<smem>>, %arg3: memref<2xi32, #tpu.memory_space<smem>>) -> (i32, i32, i32) {
    %c0_i32 = arith.constant 0 : i32
    %c0_i32_0 = arith.constant 0 : i32
    %c0_i32_1 = arith.constant 0 : i32
    return %arg0, %c0_i32, %c0_i32_0 : i32, i32, i32
  }
}

</mosaic_0001>

<bundles_post_ra>
// kernel: fused_forward.1
= control target key start
LH: loop header
LB: loop body
LE: loop exit
PB: predicated region body
PF: predicated region fallthrough
CT: control target
= control target key end

     0   :  { %s1732_s0 = inlined_call_operand.vmem [shape: s32[2], index: 0, kind: input, shape index: {}]   ;;  %s1733_s2 = inlined_call_operand.vmem [shape: s32[2,1,1], index: 2, kind: input, shape index: {}]   ;;  %s1734_s3 = inlined_call_operand.vmem [shape: s32[2,1,1], index: 3, kind: input, shape index: {}]   ;;  %s1735_s4 = inlined_call_operand.vmem [shape: f32[2,8,32], index: 4, kind: input, shape index: {}]   ;;  %s1736_s5 = inlined_call_operand.vmem [shape: f32[32,128], index: 5, kind: input, shape index: {}]   ;;  %s1737_s6 = inlined_call_operand.vmem [shape: f32[1,128], index: 6, kind: input, shape index: {}]   ;;  %s1738_s7 = inlined_call_operand.vmem [shape: f32[128,128], index: 7, kind: input, shape index: {}]   ;;  %s1739_s8 = inlined_call_operand.vmem [shape: f32[1,128], index: 8, kind: input, shape index: {}]   ;;  %s1740_s9 = inlined_call_operand.hbm [shape: f32[2,1,128], index: 9, kind: output, shape index: {0}]   ;;  %s1741_s10 = inlined_call_operand.hbm [shape: f32[2,1,128], index: 10, kind: output, shape index: {1}]   ;;  %s1742_s11 = inlined_call_operand.hbm [shape: f32[2,1,128], index: 11, kind: output, shape index: {2}]   ;;  %s1743_s12 = inlined_call_operand.vmem [shape: f32[2,1,1], index: 12, kind: output, shape index: {3}]   ;;  %s1744_s1 = inlined_call_operand.vmem [shape: s32[2], index: 1, kind: input, shape index: {}]  }
   0x1   :  { %1757 = sst [smem:[#allocation22_spill]] %s1733_s2  ;;  %s18_s23 = sshll.u32 %s1732_s0, 4  ;;  %s19_s23 = int_to_ptr.vmem [resolvable:$true] %s18_s23 }
   0x2   :  { %1758 = sst [smem:[#allocation23_spill]] %s1741_s10  ;;  %s22_s26 = sshll.u32 %s1744_s1, 4  ;;  %s23_s26 = int_to_ptr.vmem [resolvable:$true] %s22_s26 }
   0x3   :  { %1759 = sst [smem:[#allocation24_spill]] %s1742_s11  ;;  %s1169_s27 = scalar_lea.vmem %s19_s23, 16 }
   0x4   :  { %p1170_p0 = scmp.ne.s32.totalorder %s19_s23, %s1169_s27  ;;  %p1174_p1 = scmp.lt.s32.totalorder %s19_s23, %s19_s23 }
   0x5   :  { %p1175_p2 = scmp.lt.s32.totalorder %s1169_s27, %s1169_s27 }
   0x7   :  { %p1176_p3 = por %p1175_p2, %p1174_p1 }
   0x9   :  { %p1177_p4 = pnand %p1176_p3, %p1170_p0 }
   0xb   :  { %1180 = shalt.err (!%p1177_p4)  }
   0xc   :  { %s1335_s28 = smov [#allocation4]   ;;  %s1181_s29 = scalar_lea.vmem %s23_s26, 16 }
   0xd   :  { %21 = dma.vmem_to_smem %s19_s23, 16, %s1335_s28, [#allocation3] }
   0xe   :  { %p1182_p5 = scmp.ne.s32.totalorder %s23_s26, %s1181_s29  ;;  %p1186_p6 = scmp.lt.s32.totalorder %s23_s26, %s23_s26 }
   0xf   :  { %p1187_p7 = scmp.lt.s32.totalorder %s1181_s29, %s1181_s29 }
  0x11   :  { %p1188_p8 = por %p1187_p7, %p1186_p6 }
  0x13   :  { %p1189_p9 = pnand %p1188_p8, %p1182_p5 }
  0x15   :  { %1192 = shalt.err (!%p1189_p9)  }
  0x16   :  { %s1336_s0 = smov [#allocation5]  }
  0x17   :  { %25 = dma.vmem_to_smem %s23_s26, 16, %s1336_s0, [#allocation3] }
  0x18   :  { %1301 = dma.done.wait [#allocation3], 32 }
  0x19   :  { %1302 = vsyncadd [#allocation3], 4294967264 }
  0x1a   :  { %27 = sfence }
  0x1b   :  { %28 = vsyncpa [#allocation7], 0 }
  0x1c   :  { %30 = vsyncpa [#allocation7 + $0x1], 0 }
  0x1d   :  { %31 = vsyncpa [#allocation9], 0 }
  0x1e   :  { %33 = vsyncpa [#allocation9 + $0x1], 0  ;;  %s1416_s1 = smov 0   ;;  %s1418_s30 = smov 0  }
  0x1f   :  { %s1420_s13 = smov 0   ;;  %s1422_s14 = smov 0  }
  0x20   :  { %s1424_s15 = smov 0   ;;  %s1426_s16 = smov 0  }
  0x21 LB: > { %1760 = sst [smem:[#allocation14_spill]] %s1313_s1  ;;  %s1746_s17 = sadd.s32 4294967295, %s1333_s16   ;;  %s1333_s16 = sphi %s1426_s16, %s39_s16   ;;  %s1329_s15 = sphi %s1424_s15, %s1783_s15   ;;  %s1325_s14 = sphi %s1422_s14, %s1782_s14   ;;  %s1321_s13 = sphi %s1420_s13, %s1781_s13   ;;  %s1317_s30 = sphi %s1418_s30, %s1780_s30   ;;  %s1313_s1 = sphi %s1416_s1, %s1779_s1  }
  0x22   : > { %1761 = sst [smem:[#allocation15_spill]] %s1317_s30  ;;  %s1745_s18 = sadd.s32 4294967294, %s1333_s16  }
  0x23   : > { %1762 = sst [smem:[#allocation16_spill]] %s1321_s13  ;;  %s51_s19 = sadd.s32 1, %s1329_s15 }
  0x24   : > { %1763 = sst [smem:[#allocation17_spill]] %s1329_s15  ;;  %s230_s20 = sadd.s32 1, %s1321_s13 }
  0x25   : > { %1764 = sst [smem:[#allocation18_spill]] %s1333_s16  ;;  %p53_p10 = scmp.ge.s32.totalorder %s51_s19, 2 }
  0x26   : > { %p240_p11 = scmp.ne.s32.totalorder %s1321_s13, %s1317_s30  ;;  %p241_p12 = scmp.eq.s32.totalorder %s1746_s17, 1 }
  0x27   : > { %p246_p13 = scmp.ne.s32.totalorder %s1317_s30, %s1313_s1  ;;  %s1785_s19 = smov (%p53_p10, %s51_s19), 0 }
  0x28   : > { %1765 = sst [smem:[#allocation19_spill]] %s1785_s19  ;;  %p1458_p0 = por %p241_p12, %p240_p11 }
  0x29   : > { %p247_p1 = scmp.eq.s32.totalorder %s1745_s18, 1  ;;  %s227_s22 = ssub.s32 %s1329_s15, %s1785_s19 }
  0x2a   : > { %p969_p2 = scmp.ge.s32.totalorder %s1333_s16, 1  ;;  %p228_p3 = scmp.eq.s32.totalorder %s227_s22, 0 }
  0x2b   : > { %p1467_p4 = por %p247_p1, %p246_p13  ;;  %p385_p5 = scmp.lt.s32.totalorder %s1333_s16, 3 }
  0x2c   : > { %s1473_s24 = scalar_select %p228_p3, %s1321_s13, %s230_s20  }
  0x2d   : > { %s1767_s23 = scalar_select %p1467_p4, 1, 0 }
  0x2e   : > { %1769 = sst [smem:[#allocation21_spill]] %s1473_s24  ;;  %p386_p6 = pnand %p969_p2, %p385_p5 }
  0x2f   : > { %1768 = sst [smem:[#allocation20_spill]] %s1767_s23  ;;  %s1476_s25 = sand.u32 (!%p386_p6), 1, %s1317_s30   ;;  %vm475_vm0 = vcmask (!%p386_p6), 253952   ;;  %v1337_v0 = vmov (!%p386_p6), 0.0  }
  0x30   : > { %389 = sbr.rel (%p386_p6) target bundleno = 1166 (0x48e), region = 48  ;;  %p445_p7 = scmp.lt.s32.totalorder (!%p386_p6), %s1325_s14, 1  ;;  %476 = vst.msk [vmem:[#allocation2] sm:$0x1] (!%p386_p6), %vm475_vm0, %v1337_v0 }
  0x31   : > { %s451_s26 = sld [smem:[#allocation4 + %s1325_s14]] (!%p386_p6)  ;;  %s427_s20 = scalar_lea.vmem (!%p386_p6), [#allocation6], %s1476_s25 }
  0x32   : > { %s1486_s28 = sld [smem:[#allocation4 + %s1325_s14]] (!%p386_p6)  ;;  %s439_s16 = scalar_lea.vmem (!%p386_p6), [#allocation10], %s1476_s25 }
  0x33   : > { %s1489_s29 = sld [smem:[#allocation5 + %s1325_s14]] (!%p386_p6) }
  0x34   : > { %s1770_s2 = sld [smem:[#allocation22_spill]] (!%p386_p6) }
  0x37   : > { %s1483_s27 = scalar_select %p445_p7, %s1325_s14, 1 }
  0x38   : > { %s970_s30 = sadd.s32 4294967295, %s451_s26 }
  0x39   : > { %s450_s19 = scalar_lea.vmem %s1734_s3, %s1483_s27  ;;  %s468_s13 = scalar_lea.vmem %s1743_s12, %s1483_s27 }
  0x3a   : > { %s1495_s22 = scalar_lea.vmem %s1770_s2, %s1483_s27  ;;  %p971_p8 = scmp.gt.s32.totalorder %s970_s30, 0 }
  0x3b   : > { %p973_p9 = scmp.lt.s32.totalorder %s970_s30, 0  ;;  %s433_s2 = scalar_lea.vmem [#allocation8], %s1476_s25 }
  0x3c   : > { %s1787_s30 = smov (%p971_p8, %s970_s30), 0  ;;  %p977_p10 = scmp.le.s32.totalorder %s1489_s29, 0 }
  0x3d   : > { %s1789_s30 = smov (!%p973_p9, %s1787_s30), 0  ;;  %vm483_vm1 = vcmask (!%p977_p10), 261120   ;;  %v481_v8 = vld [vmem:[#allocation2] sm:$0x1] (!%p977_p10) }
  0x3e   : > { %s459_s23 = sadd.s32 %s1789_s30, %s1483_s27  ;;  %480 = sbr.rel (%p977_p10) target bundleno = 82 (0x52), region = 56 }
  0x3f   : > { %s975_s1 = sshll.u32 %s459_s23, 3 }
  0x40   : > { %s461_s0 = scalar_lea.vmem %s1735_s4, %s975_s1 }
  0x41   : > { %v482_v1 = vld [vmem:[%s461_s0] sm:$0xff] (!%p977_p10) }
  0x42   : > { %v484_v2 = vsel (!%p977_p10), %vm483_vm1, %v482_v1, 0.0 }
  0x43   : > { %v485_v3 = vrot.slane (!%p977_p10), %v484_v2, 4 }
  0x45   : > { %v486_v4 = vadd.f32 %v485_v3, %v484_v2 }
  0x47   : > { %v487_v5 = vrot.slane %v486_v4, 2 }
  0x49   : > { %v488_v6 = vadd.f32 %v487_v5, %v486_v4 }
  0x4b   : > { %v489_v7 = vrot.slane %v488_v6, 1 }
  0x4d   : > { %v490_v9 = vadd.f32 %v489_v7, %v488_v6 }
  0x4f   : > { %v491_v10 = vadd.f32 %v490_v9, %v481_v8 }
  0x51   : > { %493 = vst.msk [vmem:[#allocation2] sm:$0x1] %vm475_vm0, %v491_v10 }
  0x52 PF: > { %p979_p11 = scmp.gt.s32.totalorder %s1486_s28, 0 }
  0x54   : > { %p496_p12 = pnand %p979_p11, %p977_p10 }
  0x55   : > { %v502_v11 = vlaneseq (!%p496_p12)  ;;  %v1338_v12 = vmov (!%p496_p12), 0   ;;  %v980_v13 = vld [vmem:[%s1495_s22] ss:$0 sm:$0xff] (!%p496_p12)  ;;  %vm519_vm3 = vcmask (!%p496_p12), 261120  }
  0x56   : > { %499 = sbr.rel (%p496_p12) target bundleno = 237 (0xed), region = 60  ;;  %1158 = vset.pattern.permute.xlu0 (!%p496_p12), %v1338_v12  ;;  %v500_v16 = vld [vmem:[%s461_s0] sm:$0xff] (!%p496_p12) }
  0x57   : > { %v503_v14 = vshrl.u32 (!%p496_p12), %v502_v11, 7 }
  0x58   : > { %v512_v25 = vld [vmem:[#allocation2] sm:$0x1] (!%p496_p12) }
  0x59   : > { %vm511_vm2 = vcmp.lt.s32.totalorder (!%p496_p12), %v503_v14, %v980_v13 }
  0x5a   : > { %v513_v15 = vsel (!%p496_p12), %vm511_vm2, 1, %v1338_v12 }
  0x5b   : > { %515 = vperm.xlu0 (!%p496_p12), %1158, %v513_v15  }
  0xda   : > { %v516_v17 = vpop.permute.xlu0 %515 }
  0xdb   : > { %vm517_vm4 = vcmp.eq.s32.totalorder %v516_v17, 1 }
  0xdc   : > { %v518_v18 = vsel %vm517_vm4, %v500_v16, 0.0 }
  0xdd   : > { %v520_v19 = vsel %vm519_vm3, %v518_v18, 0.0 }
  0xde   : > { %v521_v20 = vrot.slane %v520_v19, 4 }
  0xe0   : > { %v522_v21 = vadd.f32 %v521_v20, %v520_v19 }
  0xe2   : > { %v523_v22 = vrot.slane %v522_v21, 2 }
  0xe4   : > { %v524_v23 = vadd.f32 %v523_v22, %v522_v21 }
  0xe6   : > { %v525_v24 = vrot.slane %v524_v23, 1 }
  0xe8   : > { %v526_v26 = vadd.f32 %v525_v24, %v524_v23 }
  0xea   : > { %v527_v27 = vadd.f32 %v526_v26, %v512_v25 }
  0xec   : > { %529 = vst.msk [vmem:[#allocation2] sm:$0x1] %vm475_vm0, %v527_v27 }
  0xed PF: > { %v533_v28 = vld [vmem:[%s1495_s22] sm:$0x1]  ;;  %v1339_v29 = vmov 0   ;;  %v549_v33 = vld [vmem:[%s1736_s5 + $0x8] sm:$0xff]  ;;  %v550_v34 = vld [vmem:[%s1736_s5 + $0x10] sm:$0xff]  ;;  %v1340_v35 = vmov 0.0|0.0   ;;  %v542_v60 = vlaneseq }
  0xee   : > { %1159 = vset.pattern.permute.xlu0 %v1339_v29  ;;  %v534_v30 = vcvt.s32.f32 %v533_v28  ;;  %1160 = vset.pattern.permute.xlu1 %v1339_v29  ;;  %v548_v32 = vld [vmem:[%s1736_s5] sm:$0xff]  ;;  %v551_v37 = vld [vmem:[%s1736_s5 + $0x18] sm:$0xff]  ;;  %vm1341_vm5 = vmmov 0   ;;  %v628_v40 = vld [vmem:[%s1738_s7 + $0x8] sm:$0xff]  ;;  %vm553_vm6 = vcmask 261120   ;;  %vm714_vm8 = vcmask 1040384  }
  0xef   : > { %1056 = vmatprep.subr.bf16.mxu0 %v1340_v35  ;;  %v1057_v36 = vpack.c.bf16 %v549_v33, %v548_v32  ;;  %1018 = vmatprep.mubr.msk.f32.mxu0 %vm1341_vm5, %v1337_v0  ;;  %v1060_v38 = vpack.c.bf16 %v551_v37, %v550_v34  ;;  %v627_v39 = vld [vmem:[%s1738_s7] sm:$0xff]  ;;  %v629_v41 = vld [vmem:[%s1738_s7 + $0x10] sm:$0xff]  ;;  %v630_v43 = vld [vmem:[%s1738_s7 + $0x18] sm:$0xff]  ;;  %v543_v61 = vshrl.u32 %v542_v60, 7  ;;  %v730_v14 = vand.u32 127, %v542_v60  ;;  %s776_s23 = sshll.u32 %s427_s20, 4  ;;  %s777_s23 = int_to_ptr.vmem [resolvable:$true] %s776_s23 }
  0xf0   : > { %v535_v31 = vmax.f32 %v534_v30, 1.0  ;;  %1062 = vmatprep.subr.bf16.mxu1 %v1340_v35  ;;  %1053 = vmatprep.mubr.msk.f32.mxu1 %vm1341_vm5, %v1337_v0  ;;  %v1063_v42 = vpack.c.bf16 %v628_v40, %v627_v39  ;;  %v1066_v44 = vpack.c.bf16 %v630_v43, %v629_v41  ;;  %v631_v45 = vld [vmem:[%s1738_s7 + $0x20] sm:$0xff]  ;;  %v632_v46 = vld [vmem:[%s1738_s7 + $0x28] sm:$0xff]  ;;  %v633_v48 = vld [vmem:[%s1738_s7 + $0x30] sm:$0xff]  ;;  %s753_s24 = scalar_lea.sflag [#allocation7], %s1476_s25  ;;  %s1193_s26 = scalar_lea.vmem %s777_s23, 16 }
  0xf1   : > { %1058 = vmatpush3.bf16.msra.mxu0 %v1057_v36  ;;  %v1069_v47 = vpack.c.bf16 %v632_v46, %v631_v45  ;;  %v634_v49 = vld [vmem:[%s1738_s7 + $0x38] sm:$0xff]  ;;  %v635_v51 = vld [vmem:[%s1738_s7 + $0x40] sm:$0xff]  ;;  %v636_v52 = vld [vmem:[%s1738_s7 + $0x48] sm:$0xff]  ;;  %v544_v62 = vsub.s32 0, %v543_v61  ;;  %p1194_p13 = scmp.ne.s32.totalorder %s777_s23, %s1193_s26  ;;  %s1342_s28 = smov [#allocation6]  }
  0xf2   : > { %539 = vperm.xlu0 %1159, %v535_v31   ;;  %1059 = vmatprep.subr.bf16.mxu0 %v1340_v35  ;;  %v1072_v50 = vpack.c.bf16 %v634_v49, %v633_v48  ;;  %v1075_v53 = vpack.c.bf16 %v636_v52, %v635_v51  ;;  %v637_v54 = vld [vmem:[%s1738_s7 + $0x50] sm:$0xff]  ;;  %v638_v55 = vld [vmem:[%s1738_s7 + $0x58] sm:$0xff]  ;;  %v639_v57 = vld [vmem:[%s1738_s7 + $0x60] sm:$0xff]  ;;  %s1197_s29 = sshll.u32 %s1342_s28, 4  ;;  %s1198_s29 = int_to_ptr.vmem [resolvable:$false] %s1197_s29 }
  0xf3   : > { %1064 = vmatpush3.bf16.msra.mxu1 %v1063_v42  ;;  %v1078_v56 = vpack.c.bf16 %v638_v55, %v637_v54  ;;  %v640_v58 = vld [vmem:[%s1738_s7 + $0x68] sm:$0xff]  ;;  %v536_v2 = vld [vmem:[#allocation2] sm:$0x1]  ;;  %v641_v5 = vld [vmem:[%s1738_s7 + $0x70] sm:$0xff]  ;;  %p1195_p1 = pnand %p1194_p13, %p1458_p0  ;;  %p1200_p3 = scmp.lt.s32.totalorder %s777_s23, %s1198_s29 }
  0xf4   : > { %1065 = vmatprep.subr.bf16.mxu1 %v1340_v35  ;;  %v1081_v59 = vpack.c.bf16 %v640_v58, %v639_v57  ;;  %v642_v6 = vld [vmem:[%s1738_s7 + $0x78] sm:$0xff]  ;;  %v731_v8 = vld [vmem:[%s450_s19] sm:$0x1]  ;;  %s1601_s19 = sshll.u32 %s1325_s14, 4  ;;  %s1199_s14 = scalar_lea.vmem %s1198_s29, 32 }
  0xf5   : > { %1061 = vmatpush3.bf16.msra.mxu0 %v1060_v38  ;;  %v1084_v7 = vpack.c.bf16 %v642_v6, %v641_v5  ;;  %733 = vperm.xlu1 %1160, %v731_v8   ;;  %v552_v9 = vld [vmem:[%s1737_s6] sm:$0x1]  ;;  %s1607_s18 = scalar_lea.hbm %s1740_s9, %s1601_s19  ;;  %p1196_p2 = pneg %p1195_p1 }
  0xf6   : > { %v643_v16 = vld [vmem:[%s1739_s8] sm:$0x1]  ;;  %p1201_p5 = scmp.lt.s32.totalorder %s1199_s14, %s1193_s26 }
  0xf7   : > { %1067 = vmatpush3.bf16.msra.mxu1 %v1066_v44 }
  0xf8   : > { %1068 = vmatprep.subr.bf16.mxu1 %v1340_v35  ;;  %p1202_p6 = por %p1201_p5, %p1200_p3 }
  0xfa   : > { %p1203_p7 = pnand %p1202_p6, %p1196_p2 }
  0xfb   : > { %1070 = vmatpush3.bf16.msra.mxu1 %v1069_v47 }
  0xfc   : > { %1071 = vmatprep.subr.bf16.mxu1 %v1340_v35 }
  0xff   : > { %1073 = vmatpush3.bf16.msra.mxu1 %v1072_v50 }
 0x100   : > { %1074 = vmatprep.subr.bf16.mxu1 %v1340_v35 }
 0x103   : > { %1076 = vmatpush3.bf16.msra.mxu1 %v1075_v53 }
 0x104   : > { %1077 = vmatprep.subr.bf16.mxu1 %v1340_v35 }
 0x107   : > { %1079 = vmatpush3.bf16.msra.mxu1 %v1078_v56 }
 0x108   : > { %1080 = vmatprep.subr.bf16.mxu1 %v1340_v35 }
 0x10b   : > { %1082 = vmatpush3.bf16.msra.mxu1 %v1081_v59 }
 0x10c   : > { %1083 = vmatprep.subr.bf16.mxu1 %v1340_v35 }
 0x10f   : > { %1085 = vmatpush3.bf16.msra.mxu1 %v1084_v7 }
 0x171   : > { %v540_v63 = vpop.permute.xlu0 %539 }
 0x172   : > { %v545_v1 = vrot.slane %v540_v63, %v544_v62 }
 0x174   : > { %1161 = vrcp.f32 %v545_v1  ;;  %v734_v13 = vpop.permute.xlu1 %733 }
 0x175   : > { %v738_v15 = vrot.slane %v734_v13, %v544_v62 }
 0x177   : > { %vm739_vm7 = vcmp.eq.s32.totalorder %v730_v14, %v738_v15 }
 0x178   : > { %v982_v17 = vsel %vm739_vm7, 1.0, %v1337_v0 }
 0x17e   : > { %v1162_v3 = vpop.eup %1161 }
 0x17f   : > { %v547_v4 = vmul.f32 %v1162_v3, %v536_v2 }
 0x181   : > { %1019 = vmatmul.mubr.msk.f32.vlgmr.msra.gmra.mrb[0].mxu0 %vm553_vm6, %v547_v4 }
 0x254   : > { %v623_v10 = vpop.f32.mrb[0].mxu0 }
 0x255   : > { %v624_v11 = vadd.f32 %v623_v10, %v552_v9  ;;  %v1020_v12 = vpop.f32.mrb[1].mxu0 }
 0x257   : > { %748 = vst [vmem:[%s439_s16] sm:$0x1] %v624_v11  ;;  %1054 = vmatmul.mubr.f32.vlgmr.msra.gmra.mrb[0].mxu1 %v624_v11 }
 0x32a   : > { %v710_v18 = vpop.f32.mrb[0].mxu1 }
 0x32b   : > { %v711_v19 = vadd.f32 %v710_v18, %v643_v16  ;;  %v1055_v20 = vpop.f32.mrb[1].mxu1 }
 0x32d   : > { %746 = vst [vmem:[%s427_s20] sm:$0x1] %v711_v19  ;;  %v715_v21 = vsel %vm714_vm8, %v711_v19, -inf  ;;  %v742_v22 = vmul.f32 %v982_v17, %v711_v19 }
 0x32e   : > { %716 = vmax.xlane.f32.xlu0 %v715_v21 }
 0x32f   : > { %v743_v23 = vsel %vm714_vm8, %v742_v22, 0.0 }
 0x332   : > { %744 = vadd.xlane.f32.xlu0 %v743_v23 }
 0x3bb   : > { %v717_v24 = vpop.xlane.xlu0 %716 }
 0x3bc   : > { %v718_v25 = vsub.f32 %v711_v19, %v717_v24 }
 0x3be   : > { %v719_v26 = vmul.f32 1.442695, %v718_v25 }
 0x3c0   : > { %1163 = vpow2.f32 %v719_v26 }
 0x3ca   : > { %v1164_v0 = vpop.eup %1163 }
 0x3cb   : > { %v721_v27 = vsel %vm714_vm8, %v1164_v0, 0.0 }
 0x3cc   : > { %722 = vadd.xlane.f32.xlu1 %v721_v27 }
 0x3cd   : > { %1206 = shalt.err (!%p1203_p7)
}
 0x3ce   : > { %s1207_s20 = scalar_lea.hbm %s1607_s18, 16  ;;  %s1211_s10 = scalar_lea.hbm %s1740_s9, 32 }
 0x3cf   : > { %p1208_p8 = scmp.ne.s32.totalorder %s1607_s18, %s1207_s20  ;;  %p1212_p11 = scmp.lt.u32.totalorder %s1607_s18, %s1740_s9 }
 0x3d0   : > { %p1213_p12 = scmp.lt.u32.totalorder %s1211_s10, %s1207_s20  ;;  %p1215_p1 = scmp.lt.u32.totalorder %s1207_s20, %s1607_s18 }
 0x3d1   : > { %p1209_p9 = pnand %p1208_p8, %p1458_p0 }
 0x3d2   : > { %p1214_p13 = por %p1213_p12, %p1212_p11 }
 0x3d3   : > { %p1210_p10 = pneg %p1209_p9 }
 0x3d4   : > { %p1216_p2 = por %p1215_p1, %p1214_p13 }
 0x3d6   : > { %p1217_p3 = pnand %p1216_p2, %p1210_p10 }
 0x3d8   : > { %1220 = shalt.err (!%p1217_p3)
}
 0x3d9   : > { %s1771_s30 = sld [smem:[#allocation18_spill]]  ;;  %s789_s26 = sshll.u32 %s433_s2, 4  ;;  %s1643_s26 = int_to_ptr.vmem [resolvable:$true] %s789_s26 }
 0x3da   : > { %1086 = dma.vmem_to_hbm [thread:$0]  (%p1458_p0), %s777_s23, 16, %s1607_s18, %s753_s24  }
 0x3db   : > { %s802_s28 = sshll.u32 %s439_s16, 4  ;;  %s1773_s20 = sld [smem:[#allocation23_spill]]  ;;  %s1651_s28 = int_to_ptr.vmem [resolvable:$true] %s802_s28 }
 0x3dc   : > { %s1774_s24 = sld [smem:[#allocation24_spill]]  ;;  %s1221_s10 = scalar_lea.vmem %s1643_s26, 16 }
 0x3dd   : > { %p1222_p5 = scmp.ne.s32.totalorder %s1643_s26, %s1221_s10  ;;  %s1343_s11 = smov [#allocation8]  }
 0x3de   : > { %s1225_s1 = sshll.u32 %s1343_s11, 4  ;;  %s1226_s1 = int_to_ptr.vmem [resolvable:$false] %s1225_s1 }
 0x3df   : > { %s1772_s15 = sadd.s32 4294967295, %s1771_s30   ;;  %p1223_p6 = pnand %p1222_p5, %p1458_p0 }
 0x3e0   : > { %s1631_s17 = sand.u32 1, %s1772_s15   ;;  %s1227_s30 = scalar_lea.vmem %s1226_s1, 32 }
 0x3e1   : > { %s1641_s22 = scalar_lea.hbm %s1773_s20, %s1601_s19  ;;  %s757_s16 = scalar_lea.sflag [#allocation9], %s1631_s17 }
 0x3e2   : > { %s1649_s0 = scalar_lea.hbm %s1774_s24, %s1601_s19  ;;  %p1224_p7 = pneg %p1223_p6 }
 0x3e3   : > { %p1228_p8 = scmp.lt.s32.totalorder %s1643_s26, %s1226_s1  ;;  %p1229_p9 = scmp.lt.s32.totalorder %s1227_s30, %s1221_s10 }
 0x3e5   : > { %p1230_p10 = por %p1229_p9, %p1228_p8 }
 0x3e7   : > { %p1231_p11 = pnand %p1230_p10, %p1224_p7 }
 0x459   : > { %v723_v28 = vpop.xlane.xlu1 %722 }
 0x45a   : > { %1165 = vrcp.f32 %v723_v28 }
 0x45b   : > { %1167 = vlog2.f32 %v723_v28 }
 0x464   : > { %v1166_v29 = vpop.eup %1165 }
 0x465   : > { %v1168_v30 = vpop.eup %1167  ;;  %v725_v31 = vmul.f32 %v1166_v29, %v1164_v0 }
 0x466   : > { %v727_v32 = vmul.f32 0.6931472, %v1168_v30 }
 0x467   : > { %747 = vst [vmem:[%s433_s2] sm:$0x1] %v725_v31 }
 0x468   : > { %v728_v33 = vadd.f32 %v727_v32, %v717_v24 }
 0x469   : > { %1234 = shalt.err (!%p1231_p11)
}
 0x46a   : > { %s1235_s2 = scalar_lea.hbm %s1641_s22, 16  ;;  %s1239_s15 = scalar_lea.hbm %s1773_s20, 32 }
 0x46b   : > { %p1236_p12 = scmp.ne.s32.totalorder %s1641_s22, %s1235_s2  ;;  %p1240_p2 = scmp.lt.u32.totalorder %s1641_s22, %s1773_s20 }
 0x46c   : > { %p1241_p3 = scmp.lt.u32.totalorder %s1239_s15, %s1235_s2  ;;  %p1243_p6 = scmp.lt.u32.totalorder %s1235_s2, %s1641_s22 }
 0x46d   : > { %p1237_p13 = pnand %p1236_p12, %p1458_p0 }
 0x46e   : > { %p1242_p5 = por %p1241_p3, %p1240_p2 }
 0x46f   : > { %p1238_p1 = pneg %p1237_p13 }
 0x470   : > { %p1244_p7 = por %p1243_p6, %p1242_p5 }
 0x472   : > { %p1245_p8 = pnand %p1244_p7, %p1238_p1 }
 0x474   : > { %1248 = shalt.err (!%p1245_p8)
}
 0x475   : > { %1087 = dma.vmem_to_hbm [thread:$0]  (%p1458_p0), %s1643_s26, 16, %s1641_s22, %s757_s16   ;;  %v745_v34 = vpop.xlane.xlu0 %744  ;;  %vm750_vm9 = vcmask 0  }
 0x476   : > { %s1249_s18 = scalar_lea.vmem %s1651_s28, 16  ;;  %s1344_s23 = smov [#allocation10]  }
 0x477   : > { %p1250_p9 = scmp.ne.s32.totalorder %s1651_s28, %s1249_s18  ;;  %s1253_s10 = sshll.u32 %s1344_s23, 4  ;;  %s1254_s10 = int_to_ptr.vmem [resolvable:$false] %s1253_s10 }
 0x478   : > { %s1255_s11 = scalar_lea.vmem %s1254_s10, 32  ;;  %p1256_p12 = scmp.lt.s32.totalorder %s1651_s28, %s1254_s10 }
 0x479   : > { %p1251_p10 = pnand %p1250_p9, %p1458_p0  ;;  %p1257_p13 = scmp.lt.s32.totalorder %s1255_s11, %s1249_s18 }
 0x47b   : > { %p1252_p11 = pneg %p1251_p10  ;;  %p1258_p1 = por %p1257_p13, %p1256_p12 }
 0x47d   : > { %p1259_p2 = pnand %p1258_p1, %p1252_p11 }
 0x47f   : > { %1262 = shalt.err (!%p1259_p2)
}
 0x480   : > { %s1263_s26 = scalar_lea.hbm %s1649_s0, 16  ;;  %s1267_s30 = scalar_lea.hbm %s1774_s24, 32 }
 0x481   : > { %p1264_p3 = scmp.ne.s32.totalorder %s1649_s0, %s1263_s26  ;;  %p1268_p7 = scmp.lt.u32.totalorder %s1649_s0, %s1774_s24 }
 0x482   : > { %p1269_p8 = scmp.lt.u32.totalorder %s1267_s30, %s1263_s26  ;;  %p1271_p10 = scmp.lt.u32.totalorder %s1263_s26, %s1649_s0 }
 0x483   : > { %p1265_p5 = pnand %p1264_p3, %p1458_p0 }
 0x484   : > { %p1270_p9 = por %p1269_p8, %p1268_p7 }
 0x485   : > { %p1266_p6 = pneg %p1265_p5 }
 0x486   : > { %p1272_p11 = por %p1271_p10, %p1270_p9 }
 0x488   : > { %p1273_p12 = pnand %p1272_p11, %p1266_p6 }
 0x48a   : > { %1276 = shalt.err (!%p1273_p12)
}
 0x48b   : > { %1088 = dma.vmem_to_hbm [thread:$0]  (%p1458_p0), %s1651_s28, 16, %s1649_s0, %s757_s16   ;;  %v749_v35 = vsub.f32 %v728_v33, %v745_v34 }
 0x48d   : > { %751 = vst.msk [vmem:[%s468_s13] sm:$0x1] %vm750_vm9, %v749_v35 }
 0x48e PF: > { %s1775_s29 = sld [smem:[#allocation18_spill]]  ;;  %s1776_s14 = sld [smem:[#allocation14_spill]] }
 0x494   : > { %p1102_p13 = scmp.ge.s32.totalorder %s1775_s29, 2  ;;  %s817_s23 = sand.u32 1, %s1776_s14  }
 0x495   : > { %s818_s21 = scalar_lea.sflag [#allocation7], %s817_s23 }
 0x496   : > { %p1093_p1 = pnand %p1102_p13, %p1467_p4 }
 0x498   : > { %1304 = dma.done.wait (!%p1093_p1), %s818_s21, 16  }
 0x499   : > { %1306 = vsyncadd (!%p1093_p1), %s818_s21, 4294967280  ;;  %s1778_s17 = sadd.s32 4294967294, %s1775_s29  }
 0x49a   : > { %s825_s28 = sand.u32 1, %s1778_s17  }
 0x49b   : > { %s826_s0 = scalar_lea.sflag [#allocation9], %s825_s28 }
 0x49c   : > { %1308 = dma.done.wait (!%p1093_p1), %s826_s0, 32  }
 0x49d   : > { %1310 = vsyncadd (!%p1093_p1), %s826_s0, 4294967264  ;;  %s39_s16 = sadd.s32 1, %s1775_s29   ;;  %s1779_s1 = sld [smem:[#allocation15_spill]] }
 0x49e   : > { %p36_p0 = scmp.ge.s32.totalorder %s39_s16, 4   ;;  %s1780_s30 = sld [smem:[#allocation16_spill]] }
 0x49f   : > { %s1781_s13 = sld [smem:[#allocation21_spill]]  ;;  %s1782_s14 = sld [smem:[#allocation17_spill]] }
 0x4a0   : > { %s1783_s15 = sld [smem:[#allocation19_spill]]  ;;  %38 = sbr.rel (!%p36_p0) target bundleno = 33 (0x21), region = 149 }
 0x4a7   :  { %844 = vsyncpa [#allocation7], 1 }
 0x4a8   :  { %846 = vsyncpa [#allocation7 + $0x1], 1 }
 0x4a9   :  { %847 = vsyncpa [#allocation9], 1 }
 0x4aa   :  { %849 = vsyncpa [#allocation9 + $0x1], 1 }

</bundles_post_ra>
